<compile_context>
chip_gen: v7x
topology: tpu7x:2x2x1
jax: 0.10.0
libtpu: 0.0.40
codegen_flags: <defaults>
</compile_context>

<pallas_src>
import functools

import jax
import jax.numpy as jnp
from jax import lax
from jax.experimental import pallas as pl
from jax.experimental.pallas import tpu as pltpu

_NEG = -1e30  # fill value for padded vocab columns (exp() underflows to 0)


def _bigram_logits_kernel(ids_ref, table_ref, logits_ref, *, vpad, tile):
    """Inference path: one-hot MXU gather of a (TILE, Vpad) logits tile.

    ids_ref:    (TILE, 1)    int32 VMEM
    table_ref:  (Vpad, Vpad) f32   VMEM (resident, constant block index)
    logits_ref: (TILE, Vpad) f32   VMEM
    """
    ids = ids_ref[...]                                            # (TILE, 1)
    col = lax.broadcasted_iota(jnp.int32, (tile, vpad), 1)        # (TILE, Vpad)
    one_hot = (ids == col).astype(jnp.float32)                    # (TILE, Vpad)
    logits_ref[...] = jnp.dot(one_hot, table_ref[...],
                              preferred_element_type=jnp.float32,
                              precision=lax.Precision.HIGHEST)


def _bigram_ce_kernel(ids_ref, tgt_ref, table_ref, logits_ref, ploss_ref, *,
                      vpad, tile, n_valid):
    """Training path: one-hot gather + per-tile partial cross-entropy sum.

    ids_ref/tgt_ref: (TILE, 1)    int32 VMEM
    table_ref:       (Vpad, Vpad) f32   VMEM (resident)
    logits_ref:      (TILE, Vpad) f32   VMEM
    ploss_ref:       (1, 128)     f32   VMEM (per-tile partial NLL sum, bcast)
    """
    t = pl.program_id(0)
    ids = ids_ref[...]                                            # (TILE, 1)
    tgt = tgt_ref[...]                                            # (TILE, 1)
    col = lax.broadcasted_iota(jnp.int32, (tile, vpad), 1)        # (TILE, Vpad)

    one_hot = (ids == col).astype(jnp.float32)
    logits = jnp.dot(one_hot, table_ref[...],
                     preferred_element_type=jnp.float32,
                     precision=lax.Precision.HIGHEST)             # (TILE, Vpad)
    logits_ref[...] = logits

    # Numerically stable log-softmax; padded cols are -1e30 -> exp == 0 exactly.
    m = jnp.max(logits, axis=-1, keepdims=True)                   # (TILE, 1)
    lse = jnp.log(jnp.sum(jnp.exp(logits - m), axis=-1, keepdims=True)) + m

    tgt_oh = (tgt == col).astype(jnp.float32)                     # (TILE, Vpad)
    picked = jnp.sum(tgt_oh * logits, axis=-1, keepdims=True)     # (TILE, 1)
    nll = lse - picked                                            # (TILE, 1)

    # Mask padded rows (row index >= N).
    row = t * tile + lax.broadcasted_iota(jnp.int32, (tile, 1), 0)
    nll = jnp.where(row < n_valid, nll, 0.0)

    partial = jnp.sum(nll, axis=0, keepdims=True)                 # (1, 1)
    ploss_ref[...] = jnp.broadcast_to(partial, ploss_ref.shape)


def bigram_forward(table, idx, targets=None):
    """Mirrors BigramLangaugeModel.forward.

    table:   (V, V) float32 embedding table
    idx:     (B, T) int32 token ids
    targets: (B, T) int32 token ids or None
    returns: (logits, loss)
      - targets is None: logits (B, T, V), loss None
      - else:            logits (B*T, V), loss scalar f32
    """
    B, T = idx.shape
    V = table.shape[0]
    N = B * T
    Vpad = ((V + 127) // 128) * 128                 # lane-dense vocab width
    tile = min(256, ((N + 7) // 8) * 8)             # sublane-aligned row tile
    num_tiles = -(-N // tile)
    N_pad = num_tiles * tile

    # Padded table: real values in [:V, :V]; padded columns get -1e30 so the
    # in-kernel max/logsumexp ignore them.  Padded rows are never selected by
    # the one-hot (ids < V), so their value is irrelevant (kept at 0).
    table_pad = jnp.zeros((Vpad, Vpad), dtype=jnp.float32)
    table_pad = table_pad.at[:V, :V].set(table.astype(jnp.float32))
    if Vpad > V:
        table_pad = table_pad.at[:, V:].set(_NEG)

    ids = jnp.zeros((N_pad, 1), dtype=jnp.int32)
    ids = ids.at[:N, 0].set(idx.reshape(N).astype(jnp.int32))

    if targets is None:
        logits_pad = pl.pallas_call(
            functools.partial(_bigram_logits_kernel, vpad=Vpad, tile=tile),
            out_shape=jax.ShapeDtypeStruct((N_pad, Vpad), jnp.float32),
            grid_spec=pltpu.PrefetchScalarGridSpec(
                num_scalar_prefetch=0,
                grid=(num_tiles,),
                in_specs=[
                    pl.BlockSpec((tile, 1), lambda t: (t, 0)),       # ids
                    pl.BlockSpec((Vpad, Vpad), lambda t: (0, 0)),    # table
                ],
                out_specs=pl.BlockSpec((tile, Vpad), lambda t: (t, 0)),
            ),
            compiler_params=pltpu.CompilerParams(
                dimension_semantics=("parallel",)),
        )(ids, table_pad)
        logits = logits_pad[:N, :V]
        return logits.reshape(B, T, V), None

    tgt = jnp.zeros((N_pad, 1), dtype=jnp.int32)
    tgt = tgt.at[:N, 0].set(targets.reshape(N).astype(jnp.int32))

    logits_pad, partial_loss = pl.pallas_call(
        functools.partial(_bigram_ce_kernel, vpad=Vpad, tile=tile, n_valid=N),
        out_shape=(
            jax.ShapeDtypeStruct((N_pad, Vpad), jnp.float32),
            jax.ShapeDtypeStruct((num_tiles, 128), jnp.float32),
        ),
        grid_spec=pltpu.PrefetchScalarGridSpec(
            num_scalar_prefetch=0,
            grid=(num_tiles,),
            in_specs=[
                pl.BlockSpec((tile, 1), lambda t: (t, 0)),           # ids
                pl.BlockSpec((tile, 1), lambda t: (t, 0)),           # targets
                pl.BlockSpec((Vpad, Vpad), lambda t: (0, 0)),        # table
            ],
            out_specs=(
                pl.BlockSpec((tile, Vpad), lambda t: (t, 0)),        # logits
                pl.BlockSpec((1, 128), lambda t: (t, 0)),            # tile NLL
            ),
        ),
        compiler_params=pltpu.CompilerParams(
            dimension_semantics=("parallel",)),  # no resident accumulator
    )(ids, tgt, table_pad)

    logits = logits_pad[:N, :V]
    loss = jnp.sum(partial_loss[:, 0]) * (1.0 / N)   # tiny final mean in JAX
    return logits, loss


if __name__ == "__main__":
    # Small, deterministic setup: vocab of 65 chars (Shakespeare-like), B=2, T=8.
    V = 65
    B, T = 2, 8

    key = jax.random.PRNGKey(0)
    k_table, k_idx, k_tgt = jax.random.split(key, 3)

    # nn.Embedding default init ~ N(0, 1)
    table = jax.random.normal(k_table, (V, V), dtype=jnp.float32)
    idx = jax.random.randint(k_idx, (B, T), 0, V, dtype=jnp.int32)
    targets = jax.random.randint(k_tgt, (B, T), 0, V, dtype=jnp.int32)

    # Forward with targets (logits (B*T, V) + mean CE loss), like PyTorch.
    logits, loss = bigram_forward(table, idx, targets)
    jax.block_until_ready((logits, loss))

    # Forward without targets (logits (B, T, V), loss None).
    logits_no_tgt, loss_none = bigram_forward(table, idx, None)
    jax.block_until_ready(logits_no_tgt)

    # Lightweight sanity check against pure-JAX reference.
    ref_logits = table[idx].reshape(B * T, V)
    ref_lse = jax.scipy.special.logsumexp(ref_logits, axis=-1)
    ref_loss = jnp.mean(ref_lse - ref_logits[jnp.arange(B * T),
                                             targets.reshape(-1)])
    assert logits.shape == (B * T, V)
    assert jnp.allclose(logits, ref_logits, atol=1e-4), "logits mismatch"
    assert jnp.allclose(loss, ref_loss, atol=1e-4), "loss mismatch"
    assert loss_none is None and logits_no_tgt.shape == (B, T, V)
    assert jnp.allclose(logits_no_tgt.reshape(B * T, V), ref_logits, atol=1e-4)

    print("KERNEL_OK")
</pallas_src>

<mosaic_0001>
module attributes {stable_mosaic.version = 11 : i64} {
  func.func @_bigram_ce_kernel(%arg0: i32, %arg1: memref<16x1xi32, #tpu.memory_space<vmem>>, %arg2: memref<16x1xi32, #tpu.memory_space<vmem>>, %arg3: memref<128x128xf32, #tpu.memory_space<vmem>>, %arg4: memref<16x128xf32, #tpu.memory_space<vmem>>, %arg5: memref<1x128xf32, #tpu.memory_space<vmem>>) attributes {dimension_semantics = [#tpu.dimension_semantics<parallel>], iteration_bounds = array<i64: 1>, scalar_prefetch = 0 : i64, scratch_operands = 0 : i64, tpu.core_type = #tpu.core_type<tc>, window_params = [{transform_indices = @transform_0, window_bounds = array<i64: 16, 1>}, {transform_indices = @transform_1, window_bounds = array<i64: 16, 1>}, {pipeline_mode = #tpu.pipeline_mode<synchronous>, transform_indices = @transform_2, window_bounds = array<i64: 128, 128>}, {transform_indices = @transform_3, window_bounds = array<i64: 16, 128>}, {transform_indices = @transform_4, window_bounds = array<i64: 1, 128>}]} {
    %c0 = arith.constant 0 : index
    %c0_0 = arith.constant 0 : index
    %0 = vector.load %arg1[%c0, %c0_0] : memref<16x1xi32, #tpu.memory_space<vmem>>, vector<16x1xi32>
    %c0_1 = arith.constant 0 : index
    %c0_2 = arith.constant 0 : index
    %1 = vector.load %arg2[%c0_1, %c0_2] : memref<16x1xi32, #tpu.memory_space<vmem>>, vector<16x1xi32>
    %2 = tpu.iota {dimensions = array<i32: 1>} : vector<16x128xi32>
    %3 = vector.broadcast %0 : vector<16x1xi32> to vector<16x128xi32>
    %4 = arith.cmpi eq, %3, %2 : vector<16x128xi32>
    %5 = arith.extui %4 : vector<16x128xi1> to vector<16x128xi32>
    %6 = arith.sitofp %5 : vector<16x128xi32> to vector<16x128xf32>
    %c0_3 = arith.constant 0 : index
    %c0_4 = arith.constant 0 : index
    %7 = vector.load %arg3[%c0_3, %c0_4] : memref<128x128xf32, #tpu.memory_space<vmem>>, vector<128x128xf32>
    %cst = arith.constant dense<0.000000e+00> : vector<16x128xf32>
    %8 = tpu.matmul %6, %7, %cst {dimension_numbers = #tpu.dot_dimension_numbers<[1], [0], [0], [1], [0, 0, 1, 1], [], []>, precision = #tpu.contract_precision<fp32>} : vector<16x128xf32>, vector<128x128xf32>, vector<16x128xf32> -> vector<16x128xf32>
    %c0_5 = arith.constant 0 : index
    %c0_6 = arith.constant 0 : index
    %9 = vector.load %arg4[%c0_5, %c0_6] : memref<16x128xf32, #tpu.memory_space<vmem>>, vector<16x128xf32>
    tpu.vector_store %arg4[%c0_5, %c0_6], %8 {strides = array<i32>} : memref<16x128xf32, #tpu.memory_space<vmem>>, vector<16x128xf32>,
    %cst_7 = arith.constant dense<0xFF800000> : vector<16xf32>
    %10 = vector.multi_reduction <maximumf>, %8, %cst_7 [1] : vector<16x128xf32> to vector<16xf32>
    %11 = vector.shape_cast %10 : vector<16xf32> to vector<16x1xf32>
    %12 = vector.broadcast %11 : vector<16x1xf32> to vector<16x128xf32>
    %13 = arith.subf %8, %12 : vector<16x128xf32>
    %14 = math.exp %13 : vector<16x128xf32>
    %cst_8 = arith.constant dense<0.000000e+00> : vector<16xf32>
    %15 = vector.multi_reduction <add>, %14, %cst_8 [1] : vector<16x128xf32> to vector<16xf32>
    %16 = vector.shape_cast %15 : vector<16xf32> to vector<16x1xf32>
    %17 = math.log %16 : vector<16x1xf32>
    %18 = arith.addf %17, %11 : vector<16x1xf32>
    %19 = vector.broadcast %1 : vector<16x1xi32> to vector<16x128xi32>
    %20 = arith.cmpi eq, %19, %2 : vector<16x128xi32>
    %21 = arith.extui %20 : vector<16x128xi1> to vector<16x128xi32>
    %22 = arith.sitofp %21 : vector<16x128xi32> to vector<16x128xf32>
    %23 = arith.mulf %22, %8 : vector<16x128xf32>
    %cst_9 = arith.constant dense<0.000000e+00> : vector<16xf32>
    %24 = vector.multi_reduction <add>, %23, %cst_9 [1] : vector<16x128xf32> to vector<16xf32>
    %25 = vector.shape_cast %24 : vector<16xf32> to vector<16x1xf32>
    %26 = arith.subf %18, %25 : vector<16x1xf32>
    %c16_i32 = arith.constant 16 : i32
    %27 = arith.muli %arg0, %c16_i32 : i32
    %28 = tpu.iota {dimensions = array<i32: 0>} : vector<16x1xi32>
    %29 = vector.broadcast %27 : i32 to vector<16x1xi32>
    %30 = arith.addi %29, %28 : vector<16x1xi32>
    %c16_i32_10 = arith.constant 16 : i32
    %31 = vector.broadcast %c16_i32_10 : i32 to vector<16x1xi32>
    %32 = arith.cmpi slt, %30, %31 : vector<16x1xi32>
    %cst_11 = arith.constant 0.000000e+00 : f32
    %33 = vector.broadcast %cst_11 : f32 to vector<16x1xf32>
    %34 = arith.select %32, %26, %33 : vector<16x1xi1>, vector<16x1xf32>
    %cst_12 = arith.constant dense<0.000000e+00> : vector<1xf32>
    %35 = vector.multi_reduction <add>, %34, %cst_12 [0] : vector<16x1xf32> to vector<1xf32>
    %36 = vector.shape_cast %35 : vector<1xf32> to vector<1x1xf32>
    %37 = vector.shape_cast %36 : vector<1x1xf32> to vector<1x1xf32>
    %38 = vector.broadcast %37 : vector<1x1xf32> to vector<1x128xf32>
    %c0_13 = arith.constant 0 : index
    %c0_14 = arith.constant 0 : index
    %39 = vector.load %arg5[%c0_13, %c0_14] : memref<1x128xf32, #tpu.memory_space<vmem>>, vector<1x128xf32>
    tpu.vector_store %arg5[%c0_13, %c0_14], %38 {strides = array<i32>} : memref<1x128xf32, #tpu.memory_space<vmem>>, vector<1x128xf32>,
    return
  }
  func.func @transform_0(%arg0: i32) -> (i32, i32) {
    %c0_i32 = arith.constant 0 : i32
    %c0_i32_0 = arith.constant 0 : i32
    return %arg0, %c0_i32 : i32, i32
  }
  func.func @transform_1(%arg0: i32) -> (i32, i32) {
    %c0_i32 = arith.constant 0 : i32
    %c0_i32_0 = arith.constant 0 : i32
    return %arg0, %c0_i32 : i32, i32
  }
  func.func @transform_2(%arg0: i32) -> (i32, i32) {
    %c0_i32 = arith.constant 0 : i32
    %c0_i32_0 = arith.constant 0 : i32
    %c0_i32_1 = arith.constant 0 : i32
    return %c0_i32, %c0_i32_0 : i32, i32
  }
  func.func @transform_3(%arg0: i32) -> (i32, i32) {
    %c0_i32 = arith.constant 0 : i32
    %c0_i32_0 = arith.constant 0 : i32
    return %arg0, %c0_i32 : i32, i32
  }
  func.func @transform_4(%arg0: i32) -> (i32, i32) {
    %c0_i32 = arith.constant 0 : i32
    %c0_i32_0 = arith.constant 0 : i32
    return %arg0, %c0_i32 : i32, i32
  }
}

</mosaic_0001>

<bundles_post_ra>
// kernel: tpu_custom_call.1
= control target key start
LH: loop header
LB: loop body
LE: loop exit
PB: predicated region body
PF: predicated region fallthrough
CT: control target
= control target key end

     0   :  { %10 = vsyncpa [#allocation3], 0  ;;  %s1811_s0 = inlined_call_operand.vmem [shape: s32[16,1], index: 0, kind: input, shape index: {}]   ;;  %s1812_s1 = inlined_call_operand.vmem [shape: s32[16,1], index: 1, kind: input, shape index: {}]   ;;  %s1813_s2 = inlined_call_operand.hbm [shape: f32[128,128], index: 2, kind: input, shape index: {}]   ;;  %s1814_s3 = inlined_call_operand.hbm [shape: f32[16,128], index: 3, kind: output, shape index: {0}]   ;;  %s1815_s4 = inlined_call_operand.hbm [shape: f32[1,128], index: 4, kind: output, shape index: {1}]  }
   0x1   :  { %11 = vsyncpa [#allocation4], 0 }
   0x2   :  { %12 = vsyncpa [#allocation7], 0  ;;  %s1462_s15 = smov [#allocation2]   ;;  %s1390_s19 = scalar_lea.hbm %s1813_s2, 2048 }
   0x3   :  { %s22_s16 = sshll.u32 %s1462_s15, 4  ;;  %p1391_p0 = scmp.ne.s32.totalorder %s1813_s2, %s1390_s19  ;;  %s23_s16 = int_to_ptr.vmem [resolvable:$true] %s22_s16 }
   0x4   :  { %p1394_p1 = scmp.lt.u32.totalorder %s1390_s19, %s1813_s2 }
   0x6   :  { %p1396_p2 = pnand %p1394_p1, %p1391_p0 }
   0x8   :  { %1399 = shalt.err (!%p1396_p2)
}
   0x9   :  { %s1400_s24 = scalar_lea.vmem %s23_s16, 2048  ;;  %p1405_p4 = scmp.lt.s32.totalorder %s23_s16, %s23_s16 }
   0xa   :  { %p1401_p3 = scmp.ne.s32.totalorder %s23_s16, %s1400_s24  ;;  %p1406_p5 = scmp.lt.s32.totalorder %s1400_s24, %s1400_s24 }
   0xc   :  { %p1407_p6 = por %p1406_p5, %p1405_p4 }
   0xe   :  { %p1408_p7 = pnand %p1407_p6, %p1401_p3 }
  0x10   :  { %1411 = shalt.err (!%p1408_p7)
}
  0x11   :  { %s1463_s25 = smov 128   ;;  %s1464_s26 = smov 8  }
  0x12   :  { %28 = dma.hbm_to_vmem [thread:$0]  %s1813_s2, 2048, %s23_s16, [#allocation3], %s1463_s25, %s1463_s25, %s1464_s26  }
  0x13   :  { %1456 = dma.done.wait [#allocation3], 2048  }
  0x14   :  { %1457 = vsyncadd [#allocation3], 4294965248  ;;  %v1465_v0 = vmov 0   ;;  %v32_v1 = vld [vmem:[%s1811_s0] sm:$0xff]  ;;  %v33_v2 = vld [vmem:[%s1811_s0 + $0x8] sm:$0xff] }
  0x15   :  { %1380 = vset.pattern.permute.xlu0 %v1465_v0  ;;  %1381 = vset.pattern.permute.xlu1 %v1465_v0  ;;  %v50_v3 = vld [vmem:[#allocation2] sm:$0xff]  ;;  %v51_v4 = vld [vmem:[#allocation2 + $0x8] sm:$0xff]  ;;  %v52_v5 = vld [vmem:[#allocation2 + $0x10] sm:$0xff] }
  0x16   :  { %39 = vperm.xlu0 %1380, %v32_v1   ;;  %v67_v6 = vand.u32 4294901760, %v50_v3  ;;  %v70_v7 = vand.u32 4294901760, %v51_v4  ;;  %v53_v8 = vld [vmem:[#allocation2 + $0x18] sm:$0xff]  ;;  %v73_v9 = vand.u32 4294901760, %v52_v5  ;;  %v54_v10 = vld [vmem:[#allocation2 + $0x20] sm:$0xff]  ;;  %v55_v11 = vld [vmem:[#allocation2 + $0x28] sm:$0xff] }
  0x17   :  { %v76_v12 = vand.u32 4294901760, %v53_v8  ;;  %v79_v14 = vand.u32 4294901760, %v54_v10  ;;  %v82_v15 = vand.u32 4294901760, %v55_v11  ;;  %v56_v17 = vld [vmem:[#allocation2 + $0x30] sm:$0xff]  ;;  %v57_v18 = vld [vmem:[#allocation2 + $0x38] sm:$0xff]  ;;  %v34_v19 = vld [vmem:[%s1812_s1] sm:$0xff] }
  0x18   :  { %v1516_v13 = vpack.c.bf16 %v70_v7, %v67_v6  ;;  %v85_v21 = vand.u32 4294901760, %v56_v17  ;;  %v88_v22 = vand.u32 4294901760, %v57_v18  ;;  %v58_v23 = vld [vmem:[#allocation2 + $0x40] sm:$0xff]  ;;  %v59_v24 = vld [vmem:[#allocation2 + $0x48] sm:$0xff]  ;;  %v1531_v25 = vsub.f32 %v52_v5, %v73_v9  ;;  %v1537_v29 = vld [vmem:[#allocation2 + $0x50] sm:$0xff] }
  0x19   :  { %v1518_v16 = vpack.c.bf16 %v76_v12, %v73_v9  ;;  %v1529_v20 = vpack.c.bf16 %v82_v15, %v79_v14  ;;  %v1533_v26 = vsub.f32 %v53_v8, %v76_v12  ;;  %v91_v27 = vand.u32 4294901760, %v58_v23  ;;  %v1545_v33 = vld [vmem:[#allocation2 + $0x58] sm:$0xff]  ;;  %v1561_v42 = vld [vmem:[#allocation2 + $0x60] sm:$0xff]  ;;  %v1565_v45 = vld [vmem:[#allocation2 + $0x68] sm:$0xff] }
  0x1a   :  { %42 = vperm.xlu0 %1380, %v33_v2   ;;  %1267 = vmatprep.subr.bf16.mxu0 %v1516_v13  ;;  %v94_v28 = vand.u32 4294901760, %v59_v24  ;;  %v184_v30 = vand.u32 4294901760, %v1531_v25  ;;  %v1543_v32 = vpack.c.bf16 %v88_v22, %v85_v21  ;;  %v97_v37 = vand.u32 4294901760, %v1537_v29  ;;  %v1589_v59 = vld [vmem:[#allocation2 + $0x70] sm:$0xff]  ;;  %v65_v62 = vld [vmem:[#allocation2 + $0x78] sm:$0xff] }
  0x1b   :  { %1171 = vmatprep.subr.bf16.mxu1 %v1516_v13  ;;  %1269 = vmatpush3.bf16.msra.mxu0 %v1516_v13  ;;  %v191_v31 = vand.u32 4294901760, %v1533_v26  ;;  %v1552_v38 = vsub.f32 %v54_v10, %v79_v14  ;;  %v1554_v39 = vsub.f32 %v55_v11, %v82_v15  ;;  %v100_v41 = vand.u32 4294901760, %v1545_v33 }
  0x1c   :  { %1173 = vmatpush3.bf16.msra.mxu1 %v1516_v13  ;;  %1271 = vmatprep.subr.bf16.mxu0 %v1518_v16  ;;  %v185_v35 = vsub.f32 %v1531_v25, %v184_v30  ;;  %v1558_v40 = vpack.c.bf16 %v94_v28, %v91_v27  ;;  %v1567_v46 = vsub.f32 %v50_v3, %v67_v6  ;;  %v103_v53 = vand.u32 4294901760, %v1561_v42 }
  0x1d   :  { %1175 = vmatprep.subr.bf16.mxu1 %v1518_v16  ;;  %v1547_v34 = vpack.c.bf16 %v191_v31, %v184_v30  ;;  %v192_v36 = vsub.f32 %v1533_v26, %v191_v31  ;;  %v1569_v47 = vsub.f32 %v51_v4, %v70_v7  ;;  %v198_v48 = vand.u32 4294901760, %v1552_v38 }
  0x1e   :  { %773 = vperm.xlu0 %1380, %v34_v19   ;;  %v186_v43 = vand.u32 4294901760, %v185_v35  ;;  %v205_v49 = vand.u32 4294901760, %v1554_v39  ;;  %v1575_v51 = vsub.f32 %v56_v17, %v85_v21  ;;  %v1577_v52 = vsub.f32 %v57_v18, %v88_v22 }
  0x1f   :  { %1273 = vmatpush3.bf16.msra.mxu0 %v1518_v16  ;;  %v193_v44 = vand.u32 4294901760, %v192_v36  ;;  %v199_v55 = vsub.f32 %v1552_v38, %v198_v48  ;;  %v1586_v57 = vpack.c.bf16 %v100_v41, %v97_v37  ;;  %v106_v58 = vand.u32 4294901760, %v1565_v45 }
  0x20   :  { %1177 = vmatpush3.bf16.msra.mxu1 %v1518_v16  ;;  %1275 = vmatprep.subr.bf16.mxu0 %v1529_v20  ;;  %v1580_v54 = vpack.c.bf16 %v205_v49, %v198_v48  ;;  %v206_v56 = vsub.f32 %v1554_v39, %v205_v49  ;;  %v212_v60 = vand.u32 4294901760, %v1575_v51  ;;  %v219_v61 = vand.u32 4294901760, %v1577_v52 }
  0x21   :  { %1179 = vmatprep.subr.bf16.mxu1 %v1529_v20  ;;  %v1573_v50 = vpack.c.bf16 %v193_v44, %v186_v43  ;;  %v170_v63 = vand.u32 4294901760, %v1567_v46  ;;  %v177_v0 = vand.u32 4294901760, %v1569_v47  ;;  %v200_v1 = vand.u32 4294901760, %v199_v55 }
  0x22   :  { %v207_v2 = vand.u32 4294901760, %v206_v56  ;;  %v1597_v3 = vpack.c.bf16 %v219_v61, %v212_v60  ;;  %v213_v4 = vsub.f32 %v1575_v51, %v212_v60  ;;  %v220_v5 = vsub.f32 %v1577_v52, %v219_v61 }
  0x23   :  { %1277 = vmatpush3.bf16.msra.mxu0 %v1529_v20  ;;  %v1601_v6 = vsub.f32 %v58_v23, %v91_v27  ;;  %v109_v7 = vand.u32 4294901760, %v1589_v59  ;;  %v1606_v9 = vsub.f32 %v59_v24, %v94_v28  ;;  %v112_v10 = vand.u32 4294901760, %v65_v62 }
  0x24   :  { %1181 = vmatpush3.bf16.msra.mxu1 %v1529_v20  ;;  %1279 = vmatprep.subr.bf16.mxu0 %v1543_v32  ;;  %v1604_v8 = vpack.c.bf16 %v207_v2, %v200_v1  ;;  %v214_v11 = vand.u32 4294901760, %v213_v4  ;;  %v221_v12 = vand.u32 4294901760, %v220_v5  ;;  %v1613_v15 = vpack.c.bf16 %v106_v58, %v103_v53 }
  0x25   :  { %1183 = vmatprep.subr.bf16.mxu1 %v1543_v32  ;;  %v226_v14 = vand.u32 4294901760, %v1601_v6  ;;  %v171_v17 = vsub.f32 %v1567_v46, %v170_v63  ;;  %v178_v18 = vsub.f32 %v1569_v47, %v177_v0  ;;  %v233_v19 = vand.u32 4294901760, %v1606_v9 }
  0x26   :  { %v1618_v21 = vpack.c.bf16 %v221_v12, %v214_v11  ;;  %v239_v23 = vsub.f32 %v1537_v29, %v97_v37  ;;  %v246_v24 = vsub.f32 %v1545_v33, %v100_v41  ;;  %v1630_v36 = vpack.c.bf16 %v112_v10, %v109_v7 }
  0x27   :  { %1281 = vmatpush3.bf16.msra.mxu0 %v1543_v32  ;;  %v227_v22 = vsub.f32 %v1601_v6, %v226_v14  ;;  %v1623_v27 = vpack.c.bf16 %v233_v19, %v226_v14  ;;  %v234_v28 = vsub.f32 %v1606_v9, %v233_v19  ;;  %v172_v29 = vand.u32 4294901760, %v171_v17 }
  0x28   :  { %1185 = vmatpush3.bf16.msra.mxu1 %v1543_v32  ;;  %1283 = vmatprep.subr.bf16.mxu0 %v1558_v40  ;;  %v240_v31 = vand.u32 4294901760, %v239_v23  ;;  %v247_v35 = vand.u32 4294901760, %v246_v24  ;;  %v179_v37 = vand.u32 4294901760, %v178_v18  ;;  %v253_v48 = vsub.f32 %v1561_v42, %v103_v53 }
  0x29   :  { %1187 = vmatprep.subr.bf16.mxu1 %v1558_v40  ;;  %v228_v30 = vand.u32 4294901760, %v227_v22  ;;  %v235_v33 = vand.u32 4294901760, %v234_v28  ;;  %v260_v55 = vsub.f32 %v1565_v45, %v106_v58  ;;  %v1298_v1 = vpack.c.bf16 %v177_v0, %v170_v63 }
  0x2a   :  { %v1632_v41 = vpack.c.bf16 %v247_v35, %v240_v31  ;;  %v241_v43 = vsub.f32 %v239_v23, %v240_v31  ;;  %v248_v44 = vsub.f32 %v246_v24, %v247_v35  ;;  %v254_v61 = vand.u32 4294901760, %v253_v48 }
  0x2b   :  { %1285 = vmatpush3.bf16.msra.mxu0 %v1558_v40  ;;  %v1635_v49 = vpack.c.bf16 %v235_v33, %v228_v30  ;;  %v1202_v2 = vpack.c.bf16 %v179_v37, %v172_v29  ;;  %v261_v4 = vand.u32 4294901760, %v260_v55  ;;  %v267_v53 = vsub.f32 %v1589_v59, %v109_v7 }
  0x2c   :  { %1189 = vmatpush3.bf16.msra.mxu1 %v1558_v40  ;;  %1287 = vmatprep.subr.bf16.mxu0 %v1586_v57  ;;  %v242_v56 = vand.u32 4294901760, %v241_v43  ;;  %v249_v60 = vand.u32 4294901760, %v248_v44  ;;  %v255_v42 = vsub.f32 %v253_v48, %v254_v61  ;;  %v274_v45 = vsub.f32 %v65_v62, %v112_v10 }
  0x2d   :  { %1191 = vmatprep.subr.bf16.mxu1 %v1586_v57  ;;  %v1645_v58 = vpack.c.bf16 %v261_v4, %v254_v61  ;;  %v262_v11 = vsub.f32 %v260_v55, %v261_v4  ;;  %v268_v14 = vand.u32 4294901760, %v267_v53  ;;  %v1655_v10 = vpack.c.bf16 %v1569_v47, %v1567_v46 }
  0x2e   :  { %v1642_v5 = vpack.c.bf16 %v249_v60, %v242_v56  ;;  %v256_v12 = vand.u32 4294901760, %v255_v42  ;;  %v275_v17 = vand.u32 4294901760, %v274_v45  ;;  %v1659_v28 = vpack.c.bf16 %v1533_v26, %v1531_v25 }
  0x2f   :  { %1289 = vmatpush3.bf16.msra.mxu0 %v1586_v57  ;;  %v263_v63 = vand.u32 4294901760, %v262_v11  ;;  %v269_v18 = vsub.f32 %v267_v53, %v268_v14  ;;  %v1663_v30 = vpack.c.bf16 %v1554_v39, %v1552_v38  ;;  %v1667_v31 = vpack.c.bf16 %v1577_v52, %v1575_v51 }
  0x30   :  { %1193 = vmatpush3.bf16.msra.mxu1 %v1586_v57  ;;  %1291 = vmatprep.subr.bf16.mxu0 %v1613_v15  ;;  %v1649_v0 = vpack.c.bf16 %v275_v17, %v268_v14  ;;  %v276_v19 = vsub.f32 %v274_v45, %v275_v17  ;;  %v1671_v35 = vpack.c.bf16 %v1606_v9, %v1601_v6  ;;  %v36_v25 = vlaneseq }
  0x31   :  { %1195 = vmatprep.subr.bf16.mxu1 %v1613_v15  ;;  %v1226_v22 = vpack.c.bf16 %v263_v63, %v256_v12  ;;  %v270_v59 = vand.u32 4294901760, %v269_v18  ;;  %v1673_v29 = vpack.c.bf16 %v246_v24, %v239_v23  ;;  %v1675_v46 = vpack.c.bf16 %v260_v55, %v253_v48 }
  0x32   :  { %v277_v62 = vand.u32 4294901760, %v276_v19  ;;  %v1677_v47 = vpack.c.bf16 %v274_v45, %v267_v53  ;;  %v1679_v26 = vand.u32 127, %v36_v25  ;;  %v1466_v38 = vmov 0.0  }
  0x33   :  { %1293 = vmatpush3.bf16.msra.mxu0 %v1613_v15  ;;  %v1467_v48 = vmov 1.0  }
  0x34   :  { %1197 = vmatpush3.bf16.msra.mxu1 %v1613_v15  ;;  %1295 = vmatprep.subr.bf16.mxu0 %v1630_v36  ;;  %v1651_v7 = vpack.c.bf16 %v277_v62, %v270_v59 }
  0x35   :  { %1199 = vmatprep.subr.bf16.mxu1 %v1630_v36 }
  0x37   :  { %1297 = vmatpush3.bf16.msra.mxu0 %v1630_v36 }
  0x38   :  { %1201 = vmatpush3.bf16.msra.mxu1 %v1630_v36  ;;  %1299 = vmatprep.subr.bf16.mxu0 %v1298_v1 }
  0x39   :  { %1203 = vmatprep.subr.bf16.mxu1 %v1202_v2 }
  0x95   :  { %v40_v37 = vpop.permute.xlu0 %39 }
  0x96   :  { %vm44_vm0 = vcmp.eq.s32.totalorder %v40_v37, %v1679_v26 }
  0x97   :  { %v842_v39 = vsel %vm44_vm0, 1.0, %v1466_v38 }
  0x98   :  { %v148_v51 = vsub.f32 %v842_v39, %v842_v39 }
  0x99   :  { %v1685_v52 = vpop.permute.xlu0 %42 }
  0x9a   :  { %vm45_vm1 = vcmp.eq.s32.totalorder %v1685_v52, %v1679_v26  ;;  %v149_v6 = vand.u32 4294901760, %v148_v51 }
  0x9b   :  { %v843_v9 = vsel %vm45_vm1, 1.0, %v1466_v38 }
  0x9c   :  { %v1693_v23 = vsub.f32 %v843_v9, %v843_v9  ;;  %1097 = vmatprep.mubr.f32.mxu0 %v149_v6  ;;  %v150_v24 = vsub.f32 %v148_v51, %v149_v6 }
  0x9e   :  { %v151_v33 = vand.u32 4294901760, %v150_v24  ;;  %v159_v43 = vand.u32 4294901760, %v1693_v23 }
  0xa0   :  { %992 = vmatprep.mubr.f32.mxu1 %v151_v33  ;;  %1098 = vmatmul.mubr.f32.vlgmr.msra.gmra.mrb[0].mxu0 %v159_v43  ;;  %v160_v44 = vsub.f32 %v1693_v23, %v159_v43 }
  0xa1   :  { %1301 = vmatpush3.bf16.msra.mxu0 %v1298_v1  ;;  %1132 = vmatprep.mubr.msk.f32.mxu0 %vm44_vm0, %v1467_v48 }
  0xa2   :  { %1303 = vmatprep.subr.bf16.mxu0 %v1547_v34  ;;  %v161_v55 = vand.u32 4294901760, %v160_v44 }
  0xa4   :  { %993 = vmatmul.mubr.f32.vlgmr.msra.gmra.mrb[0].mxu1 %v161_v55 }
  0xa5   :  { %1205 = vmatpush3.bf16.msra.mxu1 %v1202_v2  ;;  %1305 = vmatpush3.bf16.msra.mxu0 %v1547_v34 }
  0xa6   :  { %1027 = vmatprep.mubr.msk.f32.mxu1 %vm44_vm0, %v1467_v48  ;;  %1207 = vmatprep.subr.bf16.mxu1 %v1573_v50 }
  0xa7   :  { %1307 = vmatprep.subr.bf16.mxu0 %v1580_v54 }
  0xa9   :  { %1209 = vmatpush3.bf16.msra.mxu1 %v1573_v50  ;;  %1309 = vmatpush3.bf16.msra.mxu0 %v1580_v54  ;;  %v35_v50 = vld [vmem:[%s1812_s1 + $0x8] sm:$0xff]  ;;  %s1468_s1 = smov [#allocation5]  }
  0xaa   :  { %1211 = vmatprep.subr.bf16.mxu1 %v1604_v8  ;;  %1311 = vmatprep.subr.bf16.mxu0 %v1597_v3  ;;  %s816_s9 = sshll.u32 %s1468_s1, 4  ;;  %s817_s9 = int_to_ptr.vmem [resolvable:$true] %s816_s9 }
  0xab   :  { %s1412_s10 = scalar_lea.vmem %s817_s9, 256  ;;  %p1417_p9 = scmp.lt.s32.totalorder %s817_s9, %s817_s9 }
  0xac   :  { %p1413_p8 = scmp.ne.s32.totalorder %s817_s9, %s1412_s10  ;;  %p1418_p10 = scmp.lt.s32.totalorder %s1412_s10, %s1412_s10 }
  0xad   :  { %1213 = vmatpush3.bf16.msra.mxu1 %v1604_v8  ;;  %1313 = vmatpush3.bf16.msra.mxu0 %v1597_v3 }
  0xae   :  { %1215 = vmatprep.subr.bf16.mxu1 %v1618_v21  ;;  %1315 = vmatprep.subr.bf16.mxu0 %v1623_v27  ;;  %p1419_p11 = por %p1418_p10, %p1417_p9 }
  0xb0   :  { %p1420_p12 = pnand %p1419_p11, %p1413_p8 }
  0xb1   :  { %1217 = vmatpush3.bf16.msra.mxu1 %v1618_v21  ;;  %1317 = vmatpush3.bf16.msra.mxu0 %v1623_v27 }
  0xb2   :  { %1219 = vmatprep.subr.bf16.mxu1 %v1635_v49  ;;  %1319 = vmatprep.subr.bf16.mxu0 %v1632_v41 }
  0xb5   :  { %1221 = vmatpush3.bf16.msra.mxu1 %v1635_v49  ;;  %1321 = vmatpush3.bf16.msra.mxu0 %v1632_v41 }
  0xb6   :  { %1223 = vmatprep.subr.bf16.mxu1 %v1642_v5  ;;  %1323 = vmatprep.subr.bf16.mxu0 %v1645_v58 }
  0xb9   :  { %1225 = vmatpush3.bf16.msra.mxu1 %v1642_v5  ;;  %1325 = vmatpush3.bf16.msra.mxu0 %v1645_v58 }
  0xba   :  { %1227 = vmatprep.subr.bf16.mxu1 %v1226_v22  ;;  %1327 = vmatprep.subr.bf16.mxu0 %v1649_v0 }
  0xbd   :  { %1229 = vmatpush3.bf16.msra.mxu1 %v1226_v22  ;;  %1329 = vmatpush3.bf16.msra.mxu0 %v1649_v0 }
  0xbe   :  { %1231 = vmatprep.subr.bf16.mxu1 %v1651_v7  ;;  %1331 = vmatprep.subr.bf16.mxu0 %v1516_v13 }
  0xc0   :  { %1133 = vmatmul.mubr.msk.f32.vlgmr.msra.gmra.mrb[0].mxu0 %vm45_vm1, %v1467_v48 }
  0xc1   :  { %1233 = vmatpush3.bf16.msra.mxu1 %v1651_v7  ;;  %1333 = vmatpush3.bf16.msra.mxu0 %v1516_v13 }
  0xc2   :  { %1167 = vmatprep.mubr.msk.f32.mxu0 %vm44_vm0, %v1467_v48  ;;  %1235 = vmatprep.subr.bf16.mxu1 %v1655_v10 }
  0xc3   :  { %1335 = vmatprep.subr.bf16.mxu0 %v1518_v16 }
  0xc4   :  { %1028 = vmatmul.mubr.msk.f32.vlgmr.msra.gmra.mrb[0].mxu1 %vm45_vm1, %v1467_v48 }
  0xc5   :  { %1237 = vmatpush3.bf16.msra.mxu1 %v1655_v10  ;;  %1062 = vmatprep.mubr.f32.mxu1 %v148_v51 }
  0xc6   :  { %1337 = vmatpush3.bf16.msra.mxu0 %v1518_v16  ;;  %1239 = vmatprep.subr.bf16.mxu1 %v1659_v28 }
  0xc7   :  { %1339 = vmatprep.subr.bf16.mxu0 %v1529_v20 }
  0xc9   :  { %1241 = vmatpush3.bf16.msra.mxu1 %v1659_v28 }
  0xca   :  { %1341 = vmatpush3.bf16.msra.mxu0 %v1529_v20  ;;  %1243 = vmatprep.subr.bf16.mxu1 %v1663_v30 }
  0xcb   :  { %1343 = vmatprep.subr.bf16.mxu0 %v1543_v32 }
  0xcd   :  { %1245 = vmatpush3.bf16.msra.mxu1 %v1663_v30 }
  0xce   :  { %1345 = vmatpush3.bf16.msra.mxu0 %v1543_v32  ;;  %1247 = vmatprep.subr.bf16.mxu1 %v1667_v31 }
  0xcf   :  { %1347 = vmatprep.subr.bf16.mxu0 %v1558_v40 }
  0xd1   :  { %1249 = vmatpush3.bf16.msra.mxu1 %v1667_v31 }
  0xd2   :  { %1349 = vmatpush3.bf16.msra.mxu0 %v1558_v40  ;;  %1251 = vmatprep.subr.bf16.mxu1 %v1671_v35 }
  0xd3   :  { %1351 = vmatprep.subr.bf16.mxu0 %v1586_v57 }
  0xd5   :  { %1253 = vmatpush3.bf16.msra.mxu1 %v1671_v35 }
  0xd6   :  { %1353 = vmatpush3.bf16.msra.mxu0 %v1586_v57  ;;  %1255 = vmatprep.subr.bf16.mxu1 %v1673_v29 }
  0xd7   :  { %1355 = vmatprep.subr.bf16.mxu0 %v1613_v15 }
  0xd9   :  { %1257 = vmatpush3.bf16.msra.mxu1 %v1673_v29 }
  0xda   :  { %1357 = vmatpush3.bf16.msra.mxu0 %v1613_v15  ;;  %1259 = vmatprep.subr.bf16.mxu1 %v1675_v46 }
  0xdb   :  { %1359 = vmatprep.subr.bf16.mxu0 %v1630_v36 }
  0xdd   :  { %1261 = vmatpush3.bf16.msra.mxu1 %v1675_v46 }
  0xde   :  { %1361 = vmatpush3.bf16.msra.mxu0 %v1630_v36  ;;  %1263 = vmatprep.subr.bf16.mxu1 %v1677_v47  ;;  %v774_v36 = vpop.permute.xlu0 %773 }
  0xdf   :  { %vm778_vm2 = vcmp.eq.s32.totalorder %v774_v36, %v1679_v26 }
  0xe0   :  { %v850_v56 = vsel %vm778_vm2, 1.0, %v1466_v38 }
  0xe1   :  { %1168 = vmatmul.mubr.msk.f32.vlgmr.msra.gmra.mrb[0].mxu0 %vm45_vm1, %v1467_v48  ;;  %1265 = vmatpush3.bf16.msra.mxu1 %v1677_v47 }
  0xe4   :  { %1063 = vmatmul.mubr.f32.vlgmr.msra.gmra.mrb[0].mxu1 %v1693_v23 }
 0x1b4   :  { %v1169_v13 = vpop.f32.mrb[0].mxu0 }
 0x1b5   :  { %v740_v16 = vpop.f32.mrb[1].mxu0 }
 0x1b7   :  { %v1064_v20 = vpop.f32.mrb[0].mxu1 }
 0x1b8   :  { %v1362_v32 = vadd.f32 %v1169_v13, %v1064_v20  ;;  %v424_v34 = vpop.f32.mrb[1].mxu1 }
 0x1b9   :  { %v1363_v40 = vadd.f32 %v740_v16, %v424_v34 }
 0x1ba   :  { %751 = vst [vmem:[#allocation5 + $0x8] sm:$0xff] %v1362_v32  ;;  %754 = vmax.xlane.f32.xlu1 %v1362_v32 }
 0x1bb   :  { %750 = vst [vmem:[#allocation5] sm:$0xff] %v1363_v40  ;;  %v784_v60 = vmul.f32 %v1363_v40, %v850_v56 }
 0x1be   :  { %752 = vmax.xlane.f32.xlu1 %v1363_v40 }
 0x1cf   :  { %776 = vperm.xlu1 %1381, %v35_v50  }
 0x247   :  { %v755_v54 = vpop.xlane.xlu1 %754 }
 0x248   :  { %v757_v57 = vsub.f32 %v1362_v32, %v755_v54 }
 0x24a   :  { %v760_v3 = vmul.f32 1.442695, %v757_v57 }
 0x24b   :  { %v753_v8 = vpop.xlane.xlu1 %752 }
 0x24c   :  { %1382 = vpow2.f32 %v760_v3  ;;  %v756_v15 = vsub.f32 %v1363_v40, %v753_v8 }
 0x24e   :  { %v758_v21 = vmul.f32 1.442695, %v756_v15 }
 0x24f   :  { %v777_v41 = vpop.permute.xlu1 %776 }
 0x250   :  { %1384 = vpow2.f32 %v758_v21  ;;  %vm779_vm3 = vcmp.eq.s32.totalorder %v777_v41, %v1679_v26 }
 0x251   :  { %v851_v61 = vsel %vm779_vm3, 1.0, %v1466_v38 }
 0x252   :  { %v785_v1 = vmul.f32 %v1362_v32, %v851_v61 }
 0x256   :  { %v1383_v27 = vpop.eup %1382 }
 0x257   :  { %764 = vadd.xlane.f32.xlu1 %v1383_v27 }
 0x25a   :  { %v1385_v49 = vpop.eup %1384 }
 0x25b   :  { %762 = vadd.xlane.f32.xlu0 %v1385_v49 }
 0x25f   :  { %786 = vadd.xlane.f32.xlu0 %v784_v60 }
 0x263   :  { %788 = vadd.xlane.f32.xlu0 %v785_v1 }
 0x264   :  { %1423 = shalt.err (!%p1420_p12)
}
 0x265   :  { %s1424_s13 = scalar_lea.hbm %s1814_s3, 256 }
 0x266   :  { %p1425_p13 = scmp.ne.s32.totalorder %s1814_s3, %s1424_s13  ;;  %p1428_p0 = scmp.lt.u32.totalorder %s1424_s13, %s1814_s3 }
 0x268   :  { %p1430_p1 = pnand %p1428_p0, %p1425_p13 }
 0x26a   :  { %1433 = shalt.err (!%p1430_p1)
}
 0x26b   :  { %822 = dma.vmem_to_hbm [thread:$0]  %s817_s9, 256, %s1814_s3, [#allocation4], %s1463_s25, %s1463_s25, %s1464_s26  }
 0x26c   :  { %s1469_s3 = smov [#allocation6]  }
 0x26d   :  { %s829_s20 = sshll.u32 %s1469_s3, 4  ;;  %s830_s20 = int_to_ptr.vmem [resolvable:$true] %s829_s20 }
 0x26e   :  { %s1434_s21 = scalar_lea.vmem %s830_s20, 16  ;;  %s1438_s22 = scalar_lea.vmem %s830_s20, 32 }
 0x26f   :  { %p1435_p2 = scmp.ne.s32.totalorder %s830_s20, %s1434_s21  ;;  %p1439_p3 = scmp.lt.s32.totalorder %s830_s20, %s830_s20 }
 0x270   :  { %p1440_p4 = scmp.lt.s32.totalorder %s1438_s22, %s1434_s21 }
 0x272   :  { %p1441_p5 = por %p1440_p4, %p1439_p3 }
 0x274   :  { %p1442_p6 = pnand %p1441_p5, %p1435_p2 }
 0x2e4   :  { %v765_v2 = vpop.xlane.xlu1 %764 }
 0x2e5   :  { %1386 = vlog2.f32 %v765_v2 }
 0x2e8   :  { %v763_v4 = vpop.xlane.xlu0 %762 }
 0x2e9   :  { %1388 = vlog2.f32 %v763_v4 }
 0x2ec   :  { %v787_v53 = vpop.xlane.xlu0 %786 }
 0x2ef   :  { %v1387_v5 = vpop.eup %1386 }
 0x2f0   :  { %v769_v42 = vmul.f32 0.6931472, %v1387_v5  ;;  %v789_v14 = vpop.xlane.xlu0 %788 }
 0x2f2   :  { %v771_v11 = vadd.f32 %v769_v42, %v755_v54 }
 0x2f3   :  { %v1389_v45 = vpop.eup %1388 }
 0x2f4   :  { %v767_v58 = vmul.f32 0.6931472, %v1389_v45  ;;  %v791_v63 = vsub.f32 %v771_v11, %v789_v14 }
 0x2f6   :  { %v770_v12 = vadd.f32 %v767_v58, %v753_v8 }
 0x2f8   :  { %v790_v17 = vsub.f32 %v770_v12, %v787_v53 }
 0x2fa   :  { %v803_v0 = vadd.f32 %v791_v63, %v790_v17 }
 0x2fc   :  { %v804_v18 = vrot.slane %v803_v0, 4 }
 0x2fe   :  { %v805_v19 = vadd.f32 %v804_v18, %v803_v0 }
 0x300   :  { %v806_v22 = vrot.slane %v805_v19, 2 }
 0x302   :  { %v807_v59 = vadd.f32 %v806_v22, %v805_v19 }
 0x304   :  { %v808_v62 = vrot.slane %v807_v59, 1 }
 0x306   :  { %v809_v7 = vadd.f32 %v808_v62, %v807_v59 }
 0x308   :  { %810 = vst [vmem:[#allocation6] sm:$0x1] %v809_v7 }
 0x309   :  { %1445 = shalt.err (!%p1442_p6)
}
 0x30a   :  { %s1446_s25 = scalar_lea.hbm %s1815_s4, 16 }
 0x30b   :  { %p1447_p7 = scmp.ne.s32.totalorder %s1815_s4, %s1446_s25  ;;  %p1450_p8 = scmp.lt.u32.totalorder %s1446_s25, %s1815_s4 }
 0x30d   :  { %p1452_p9 = pnand %p1450_p8, %p1447_p7 }
 0x30f   :  { %1455 = shalt.err (!%p1452_p9)
}
 0x310   :  { %832 = dma.vmem_to_hbm [thread:$0]  %s830_s20, 16, %s1815_s4, [#allocation7]  }
 0x311   :  { %1458 = dma.done.wait [#allocation4], 256  }
 0x312   :  { %1459 = vsyncadd [#allocation4], 4294967040 }
 0x313   :  { %1460 = dma.done.wait [#allocation7], 16  }
 0x314   :  { %1461 = vsyncadd [#allocation7], 4294967280 }
 0x315   :  { %839 = vsyncpa [#allocation3], 1 }
 0x316   :  { %840 = vsyncpa [#allocation4], 1 }
 0x317   :  { %841 = vsyncpa [#allocation7], 1 }

</bundles_post_ra>
